<compile_context>
chip_gen: v6e
topology: v6e:2x2x1
jax: 0.10.0
libtpu: 0.0.40
codegen_flags: <defaults>
</compile_context>

<pallas_src>
import functools

import jax
import jax.numpy as jnp
from jax.experimental import pallas as pl
from jax.experimental.pallas import tpu as pltpu


_BLOCK_BYTES_BUDGET = 4 * 1024 * 1024    # per pipeline buffer of the input
_LANE_TILE_CAP = 2048                    # reduction-axis (lane) tile cap, elems
_VMEM_LIMIT_BYTES = 32 * 1024 * 1024     # safe on v5e/v6e (128 MiB) and v7x (64 MiB)
_MIN_PALLAS_BYTES = 256 * 1024           # below this, plain XLA is strictly faster


def _round_down(x, m):
    return (x // m) * m


def _sublane_granularity(dtype):
    """Minimum sublane tile for dtype: 8 (32-bit), 16 (16-bit), 32 (8-bit)."""
    itemsize = jnp.dtype(dtype).itemsize
    return max(8, 32 // max(itemsize, 1))


def _pick_col_tile(hw, elem_budget, gran, lane_tile_cap):
    """Lane (reduction) tile. Always bounded; ragged tails are masked in-kernel."""
    cap = min(max(128, _round_down(lane_tile_cap, 128)),
              max(128, _round_down(elem_budget // gran, 128)))
    if hw <= cap:
        return hw                                    # full extent (exact, no mask)
    if hw % 128 == 0:
        # Prefer a large exact multiple-of-128 divisor (no masking needed).
        t = cap
        while t >= max(128, cap // 2):
            if hw % t == 0:
                return t
            t -= 128
    return cap                                       # cdiv grid + in-kernel masking


def _pick_row_tile(r, col_tile, elem_budget, gran):
    """Sublane tile: dtype-granular, VMEM-budget-capped, >=2 tiles when possible."""
    budget_cap = max(gran, _round_down(elem_budget // max(col_tile, 1), gran))
    if r >= 2 * gran:
        # Guarantee the "parallel" row axis splits across both v7x TensorCores.
        core_cap = max(gran, _round_down((r + 1) // 2, gran))
    else:
        core_cap = r
    row_tile = max(gran, min(budget_cap, core_cap))
    if row_tile >= r:
        row_tile = r                                 # full extent: always legal
    return row_tile


def _concat_pool_kernel(x_ref, out_ref, m_acc, s_acc, *,
                        inv_hw, hw, col_tile, ragged, mask_min):
    """Grid = (row_tiles, col_tiles); reduction over the (last) column axis."""
    j = pl.program_id(1)

    x = x_ref[...]                                   # (row_tile, col_tile), input dtype
    if ragged:
        # Last column tile may contain stale/padded lanes; mask by global index.
        col0 = j * col_tile
        idx = jax.lax.broadcasted_iota(jnp.int32, x.shape, 1) + col0
        valid = idx < hw
        x_max = jnp.where(valid, x, jnp.array(mask_min, dtype=x.dtype))
        x_sum = jnp.where(valid, x, jnp.array(0, dtype=x.dtype))
    else:
        x_max = x
        x_sum = x

    # Max is exact in the input dtype; only the (row_tile, 1) result is widened.
    tmax = jnp.max(x_max, axis=-1, keepdims=True).astype(jnp.float32)
    # Sum reduces straight into f32 without materializing a full-tile f32 copy.
    tsum = jnp.sum(x_sum, axis=-1, keepdims=True, dtype=jnp.float32)

    @pl.when(j == 0)
    def _():
        m_acc[...] = tmax
        s_acc[...] = tsum

    @pl.when(j > 0)
    def _():
        m_acc[...] = jnp.maximum(m_acc[...], tmax)
        s_acc[...] = s_acc[...] + tsum

    @pl.when(j == pl.num_programs(1) - 1)
    def _():
        out_ref[0, :, :] = m_acc[...].astype(out_ref.dtype)
        out_ref[1, :, :] = (s_acc[...] * inv_hw).astype(out_ref.dtype)


def adaptive_concat_pool2d(x, sz=(1, 1), *,
                           min_pallas_bytes=_MIN_PALLAS_BYTES,
                           lane_tile_cap=_LANE_TILE_CAP):
    """Pallas AdaptiveConcatPool2d.forward: (B,C,H,W) -> (B, 2C, 1, 1)."""
    if sz not in (None, 1, (1, 1)):
        # TODO(synk): general adaptive output sizes (sz != (1,1), PyTorch adaptive
        # binning) are not implemented; only the module's default global pooling is.
        raise NotImplementedError("only sz=(1,1) (global pooling) is supported")

    b, c, h, w = x.shape
    r = b * c
    hw = h * w
    itemsize = jnp.dtype(x.dtype).itemsize

    # Small-input bypass: kernel launch + DMA setup dominates; let XLA fuse it.
    if r * hw * itemsize < min_pallas_bytes:
        mx = jnp.max(x, axis=(2, 3), keepdims=True)
        avg = jnp.mean(x, axis=(2, 3), keepdims=True).astype(x.dtype)
        return jnp.concatenate([mx, avg], axis=1)

    gran = _sublane_granularity(x.dtype)
    elem_budget = max(gran * 128, _BLOCK_BYTES_BUDGET // itemsize)

    col_tile = _pick_col_tile(hw, elem_budget, gran, lane_tile_cap)
    row_tile = _pick_row_tile(r, col_tile, elem_budget, gran)
    ragged = (hw % col_tile) != 0
    grid = (pl.cdiv(r, row_tile), pl.cdiv(hw, col_tile))

    # Free (metadata-only) view: contiguous NCHW -> lane-dense (B*C, H*W) slab.
    x2 = x.reshape(r, hw)

    if jnp.issubdtype(x.dtype, jnp.floating):
        mask_min = float("-inf")
    else:
        mask_min = int(jnp.iinfo(x.dtype).min)

    kernel = functools.partial(
        _concat_pool_kernel,
        inv_hw=1.0 / float(hw), hw=hw, col_tile=col_tile,
        ragged=ragged, mask_min=mask_min)

    in_map = lambda i, j: (i, j)
    total_steps = grid[0] * grid[1]
    in_spec = pl.BlockSpec((row_tile, col_tile), in_map)
    if total_steps >= 3:
        try:
            # Deeper input pipelining hides DMA issue latency for this mem-bound pass.
            in_spec = pl.BlockSpec((row_tile, col_tile), in_map,
                                   pipeline_mode=pl.Buffered(3))
        except TypeError:
            in_spec = pl.BlockSpec((row_tile, col_tile), in_map)

    cost = pl.CostEstimate(
        flops=2 * r * hw,
        transcendentals=0,
        bytes_accessed=r * hw * itemsize + 2 * r * itemsize)

    pooled = pl.pallas_call(
        kernel,
        out_shape=jax.ShapeDtypeStruct((2, r, 1), x.dtype),
        grid_spec=pltpu.PrefetchScalarGridSpec(
            num_scalar_prefetch=0,
            grid=grid,
            in_specs=[in_spec],
            out_specs=pl.BlockSpec((2, row_tile, 1), lambda i, j: (0, i, 0)),
            scratch_shapes=[
                pltpu.VMEM((row_tile, 1), jnp.float32),  # running max
                pltpu.VMEM((row_tile, 1), jnp.float32),  # running sum
            ],
        ),
        compiler_params=pltpu.CompilerParams(
            dimension_semantics=("parallel", "arbitrary"),
            vmem_limit_bytes=_VMEM_LIMIT_BYTES,
        ),
        cost_estimate=cost,
    )(x2)

    # Tiny-output glue: torch.cat([max_pool, avg_pool], dim=1) and (1,1) spatial dims.
    mx = pooled[0].reshape(b, c, 1, 1)
    avg = pooled[1].reshape(b, c, 1, 1)
    return jnp.concatenate([mx, avg], axis=1)


if __name__ == "__main__":
    key = jax.random.PRNGKey(0)
    k1, k2, k3 = jax.random.split(key, 3)

    def reference(x):
        xf = x.astype(jnp.float32)
        mx = jnp.max(xf, axis=(2, 3), keepdims=True)
        av = jnp.mean(xf, axis=(2, 3), keepdims=True)
        return jnp.concatenate([mx, av], axis=1).astype(x.dtype)

    # 1) Small NCHW feature map, forced through the Pallas kernel.
    x1 = jax.random.normal(k1, (2, 4, 16, 16), dtype=jnp.float32)
    y1 = jax.block_until_ready(adaptive_concat_pool2d(x1, min_pallas_bytes=0))
    assert y1.shape == (2, 8, 1, 1) and y1.dtype == x1.dtype
    assert bool(jnp.allclose(y1, reference(x1), rtol=1e-6, atol=1e-6))

    # 2) Ragged H*W (masked reduction tail), rows not a multiple of 8 (padded row
    #    tile, discarded on writeback), and >=2 row tiles (megacore split).
    x2 = jax.random.normal(k2, (4, 5, 16, 13), dtype=jnp.float32)
    y2 = jax.block_until_ready(
        adaptive_concat_pool2d(x2, min_pallas_bytes=0, lane_tile_cap=128))
    assert y2.shape == (4, 10, 1, 1)
    assert bool(jnp.allclose(y2, reference(x2), rtol=1e-5, atol=1e-5))

    # 3) bf16 input (16-row sublane granularity), forced Pallas path.
    x3 = jax.random.normal(k3, (2, 16, 16, 16), dtype=jnp.bfloat16)
    y3 = jax.block_until_ready(adaptive_concat_pool2d(x3, min_pallas_bytes=0))
    assert y3.shape == (2, 32, 1, 1) and y3.dtype == jnp.bfloat16
    assert bool(jnp.allclose(y3.astype(jnp.float32),
                             reference(x3).astype(jnp.float32),
                             rtol=2e-2, atol=2e-2))

    # 4) Default small-input bypass (plain XLA path).
    y4 = jax.block_until_ready(adaptive_concat_pool2d(x1))
    assert bool(jnp.allclose(y4, reference(x1), rtol=1e-6, atol=1e-6))

    print("KERNEL_OK")
</pallas_src>

<mosaic_0001>
module attributes {stable_mosaic.version = 11 : i64} {
  func.func @_concat_pool_kernel(%arg0: i32, %arg1: i32, %arg2: memref<8x256xf32, #tpu.memory_space<vmem>>, %arg3: memref<2x8x1xf32, #tpu.memory_space<vmem>>, %arg4: memref<8x1xf32, #tpu.memory_space<vmem>>, %arg5: memref<8x1xf32, #tpu.memory_space<vmem>>) attributes {dimension_semantics = [#tpu.dimension_semantics<parallel>, #tpu.dimension_semantics<arbitrary>], iteration_bounds = array<i64: 1, 1>, scalar_prefetch = 0 : i64, scratch_operands = 2 : i64, tpu.core_type = #tpu.core_type<tc>, window_params = [{transform_indices = @transform_0, window_bounds = array<i64: 8, 256>}, {transform_indices = @transform_1, window_bounds = array<i64: 2, 8, 1>}]} {
    %c0 = arith.constant 0 : index
    %c0_0 = arith.constant 0 : index
    %0 = vector.load %arg2[%c0, %c0_0] : memref<8x256xf32, #tpu.memory_space<vmem>>, vector<8x256xf32>
    %cst = arith.constant dense<0xFF800000> : vector<8xf32>
    %1 = vector.multi_reduction <maximumf>, %0, %cst [1] : vector<8x256xf32> to vector<8xf32>
    %2 = vector.shape_cast %1 : vector<8xf32> to vector<8x1xf32>
    %cst_1 = arith.constant dense<0.000000e+00> : vector<8xf32>
    %3 = vector.multi_reduction <add>, %0, %cst_1 [1] : vector<8x256xf32> to vector<8xf32>
    %4 = vector.shape_cast %3 : vector<8xf32> to vector<8x1xf32>
    %c0_i32 = arith.constant 0 : i32
    %5 = arith.cmpi eq, %arg1, %c0_i32 : i32
    %6 = arith.extui %5 : i1 to i32
    %c0_i32_2 = arith.constant 0 : i32
    %7 = arith.cmpi ne, %6, %c0_i32_2 : i32
    scf.if %7 {
      %c0_7 = arith.constant 0 : index
      %c0_8 = arith.constant 0 : index
      %14 = vector.load %arg4[%c0_7, %c0_8] : memref<8x1xf32, #tpu.memory_space<vmem>>, vector<8x1xf32>
      tpu.vector_store %arg4[%c0_7, %c0_8], %2 {strides = array<i32>} : memref<8x1xf32, #tpu.memory_space<vmem>>, vector<8x1xf32>,
      %c0_9 = arith.constant 0 : index
      %c0_10 = arith.constant 0 : index
      %15 = vector.load %arg5[%c0_9, %c0_10] : memref<8x1xf32, #tpu.memory_space<vmem>>, vector<8x1xf32>
      tpu.vector_store %arg5[%c0_9, %c0_10], %4 {strides = array<i32>} : memref<8x1xf32, #tpu.memory_space<vmem>>, vector<8x1xf32>,
    } else {
    }
    %c0_i32_3 = arith.constant 0 : i32
    %8 = arith.cmpi sgt, %arg1, %c0_i32_3 : i32
    %9 = arith.extui %8 : i1 to i32
    %c0_i32_4 = arith.constant 0 : i32
    %10 = arith.cmpi ne, %9, %c0_i32_4 : i32
    scf.if %10 {
      %c0_7 = arith.constant 0 : index
      %c0_8 = arith.constant 0 : index
      %14 = vector.load %arg4[%c0_7, %c0_8] : memref<8x1xf32, #tpu.memory_space<vmem>>, vector<8x1xf32>
      %15 = arith.maximumf %14, %2 : vector<8x1xf32>
      %c0_9 = arith.constant 0 : index
      %c0_10 = arith.constant 0 : index
      %16 = vector.load %arg4[%c0_9, %c0_10] : memref<8x1xf32, #tpu.memory_space<vmem>>, vector<8x1xf32>
      tpu.vector_store %arg4[%c0_9, %c0_10], %15 {strides = array<i32>} : memref<8x1xf32, #tpu.memory_space<vmem>>, vector<8x1xf32>,
      %c0_11 = arith.constant 0 : index
      %c0_12 = arith.constant 0 : index
      %17 = vector.load %arg5[%c0_11, %c0_12] : memref<8x1xf32, #tpu.memory_space<vmem>>, vector<8x1xf32>
      %18 = arith.addf %17, %4 : vector<8x1xf32>
      %c0_13 = arith.constant 0 : index
      %c0_14 = arith.constant 0 : index
      %19 = vector.load %arg5[%c0_13, %c0_14] : memref<8x1xf32, #tpu.memory_space<vmem>>, vector<8x1xf32>
      tpu.vector_store %arg5[%c0_13, %c0_14], %18 {strides = array<i32>} : memref<8x1xf32, #tpu.memory_space<vmem>>, vector<8x1xf32>,
    } else {
    }
    %c0_i32_5 = arith.constant 0 : i32
    %11 = arith.cmpi eq, %arg1, %c0_i32_5 : i32
    %12 = arith.extui %11 : i1 to i32
    %c0_i32_6 = arith.constant 0 : i32
    %13 = arith.cmpi ne, %12, %c0_i32_6 : i32
    scf.if %13 {
      %c0_7 = arith.constant 0 : index
      %c0_8 = arith.constant 0 : index
      %14 = vector.load %arg4[%c0_7, %c0_8] : memref<8x1xf32, #tpu.memory_space<vmem>>, vector<8x1xf32>
      %c0_9 = arith.constant 0 : index
      %c0_10 = arith.constant 0 : index
      %c0_11 = arith.constant 0 : index
      %15 = vector.load %arg3[%c0_9, %c0_10, %c0_11] : memref<2x8x1xf32, #tpu.memory_space<vmem>>, vector<1x8x1xf32>
      %16 = vector.shape_cast %15 : vector<1x8x1xf32> to vector<8x1xf32>
      %17 = vector.shape_cast %14 : vector<8x1xf32> to vector<1x8x1xf32>
      tpu.vector_store %arg3[%c0_9, %c0_10, %c0_11], %17 {strides = array<i32>} : memref<2x8x1xf32, #tpu.memory_space<vmem>>, vector<1x8x1xf32>,
      %c0_12 = arith.constant 0 : index
      %c0_13 = arith.constant 0 : index
      %18 = vector.load %arg5[%c0_12, %c0_13] : memref<8x1xf32, #tpu.memory_space<vmem>>, vector<8x1xf32>
      %cst_14 = arith.constant 3.906250e-03 : f32
      %19 = vector.broadcast %cst_14 : f32 to vector<8x1xf32>
      %20 = arith.mulf %18, %19 : vector<8x1xf32>
      %c1 = arith.constant 1 : index
      %c0_15 = arith.constant 0 : index
      %c0_16 = arith.constant 0 : index
      %21 = vector.load %arg3[%c1, %c0_15, %c0_16] : memref<2x8x1xf32, #tpu.memory_space<vmem>>, vector<1x8x1xf32>
      %22 = vector.shape_cast %21 : vector<1x8x1xf32> to vector<8x1xf32>
      %23 = vector.shape_cast %20 : vector<8x1xf32> to vector<1x8x1xf32>
      tpu.vector_store %arg3[%c1, %c0_15, %c0_16], %23 {strides = array<i32>} : memref<2x8x1xf32, #tpu.memory_space<vmem>>, vector<1x8x1xf32>,
    } else {
    }
    return
  }
  func.func @transform_0(%arg0: i32, %arg1: i32) -> (i32, i32) {
    %c0_i32 = arith.constant 0 : i32
    return %arg0, %arg1 : i32, i32
  }
  func.func @transform_1(%arg0: i32, %arg1: i32) -> (i32, i32, i32) {
    %c0_i32 = arith.constant 0 : i32
    %c0_i32_0 = arith.constant 0 : i32
    %c0_i32_1 = arith.constant 0 : i32
    return %c0_i32, %arg0, %c0_i32_0 : i32, i32, i32
  }
}

</mosaic_0001>

<bundles_post_ra>
// kernel: tpu_custom_call.1
= control target key start
LH: loop header
LB: loop body
LE: loop exit
PB: predicated region body
PF: predicated region fallthrough
CT: control target
= control target key end

     0   :  { %6 = vsyncpa [#allocation5], 0  ;;  %s85_s6 = smov [#allocation4]   ;;  %s105_s0 = inlined_call_operand.hbm [shape: f32[8,256], index: 0, kind: input, shape index: {}]   ;;  %s106_s1 = inlined_call_operand.vmem [shape: f32[2,8,1], index: 1, kind: output, shape index: {}]  }
   0x1   :  { %s13_s7 = sshll.u32 %s85_s6, 4  ;;  %s14_s7 = int_to_ptr.vmem [resolvable:$true] %s13_s7 }
   0x2   :  { %s71_s8 = scalar_lea.vmem %s14_s7, 256  ;;  %p76_p1 = scmp.lt.s32.totalorder %s14_s7, %s14_s7 }
   0x3   :  { %p72_p0 = scmp.ne.s32.totalorder %s14_s7, %s71_s8  ;;  %p77_p2 = scmp.lt.s32.totalorder %s71_s8, %s71_s8 }
   0x5   :  { %p78_p3 = por %p77_p2, %p76_p1 }
   0x7   :  { %p79_p4 = pnand %p78_p3, %p72_p0 }
   0x9   :  { %82 = shalt.err (!%p79_p4)
}
   0xa   :  { %16 = dma.hbm_to_vmem [thread:$0]  %s105_s0, 256, %s14_s7, [#allocation5]  }
   0xb   :  { %83 = dma.done.wait [#allocation5], 256  }
   0xc   :  { %84 = vsyncadd [#allocation5], 4294967040  ;;  %v20_v0 = vld [vmem:[#allocation4] sm:$0xff]  ;;  %v21_v1 = vld [vmem:[#allocation4 + $0x8] sm:$0xff]  ;;  %vm32_vm0 = vcmask 7168  }
   0xd   :  { %v25_v2 = vadd.f32 %v21_v1, %v20_v0  ;;  %v22_v3 = vmax.f32 %v20_v0, %v21_v1 }
   0xf   :  { %26 = vadd.xlane.f32.xlu0 %v25_v2 }
  0x13   :  { %23 = vmax.xlane.f32.xlu0 %v22_v3 }
  0x98   :  { %v27_v4 = vpop.xlane.xlu0 %26 }
  0x99   :  { %34 = vst.msk [vmem:[#allocation3] sm:$0xff] %vm32_vm0, %v27_v4 }
  0x9c   :  { %v24_v5 = vpop.xlane.xlu0 %23 }
  0x9d   :  { %33 = vst.msk [vmem:[#allocation2] sm:$0xff] %vm32_vm0, %v24_v5 }
  0xa0   :  { %v52_v6 = vld [vmem:[#allocation3] sm:$0xff] }
  0xa1   :  { %v53_v7 = vmul.f32 0.00390625, %v52_v6 }
  0xa3   :  { %61 = vst.msk [vmem:[%s106_s1 + $0x8] sm:$0xff] %vm32_vm0, %v53_v7 }
  0xa4   :  { %v49_v8 = vld [vmem:[#allocation2] sm:$0xff] }
  0xa5   :  { %51 = vst.msk [vmem:[%s106_s1] sm:$0xff] %vm32_vm0, %v49_v8 }
  0xa6   :  { %60 = vsyncpa [#allocation5], 1 }

</bundles_post_ra>
